<compile_context>
chip_gen: v7x
topology: tpu7x:2x2x1
jax: 0.10.0
libtpu: 0.0.40
codegen_flags: <defaults>
</compile_context>

<pallas_src>
import math
import functools

import jax
import jax.numpy as jnp
from jax.experimental import pallas as pl
from jax.experimental.pallas import tpu as pltpu


# ---------------------------------------------------------------------------
# Kernels
# ---------------------------------------------------------------------------
def _add_pe_kernel(pe_ref, x_ref, o_ref):
    """Broadcast add: pe_ref (tq, d_fold) f32, x_ref/o_ref (tb, tq, d_fold)."""
    o_ref[...] = x_ref[...] + pe_ref[...].astype(x_ref.dtype)


def _compute_pe_kernel(x_ref, o_ref, *, rows_per_block, d_model, fold):
    """Builds the sinusoid table in-kernel (cost amortised over the batch dim)."""
    d_fold = d_model * fold
    row0 = (pl.program_id(1) * rows_per_block).astype(jnp.float32)

    # Column-only quantities on a single (1, d_fold) row (cheap: d_fold values).
    col = jax.lax.broadcasted_iota(jnp.int32, (1, d_fold), 1)
    dim = col % d_model                           # feature index within d_model
    sub = (col // d_model).astype(jnp.float32)    # folded sequence sub-row
    pair = ((dim // 2) * 2).astype(jnp.float32)
    inv_freq = jnp.exp(pair * (-math.log(10000.0) / d_model))  # exp on d_fold values only
    is_odd = (dim % 2) == 1

    # Row-only quantity: folded-row index as a (rows, 1) column.
    r = jax.lax.broadcasted_iota(jnp.float32, (rows_per_block, 1), 0) + row0
    pos = r * float(fold) + sub                   # exact integer original positions
    ang = pos * inv_freq                          # same op order as the reference buffer
    pe = jnp.where(is_odd, jnp.cos(ang), jnp.sin(ang))
    o_ref[...] = x_ref[...] + pe.astype(x_ref.dtype)


# ---------------------------------------------------------------------------
# Wrapper
# ---------------------------------------------------------------------------
def positional_encoding(x, dropout_p=0.1, max_len=5000):
    """Forward pass of PositionalEncoding (eval mode: dropout is identity)."""
    del dropout_p  # identity in eval mode
    batch, seq_len, d_model = x.shape
    assert seq_len <= max_len
    itemsize = x.dtype.itemsize

    # ---- lane fold: make the last block dim a multiple of 128 when possible ----
    fold = 128 // math.gcd(d_model, 128)
    if fold > 1 and not (seq_len % fold == 0 and d_model * fold <= 4096):
        fold = 1
    s_fold = seq_len // fold
    d_fold = d_model * fold
    x_f = x.reshape(batch, s_fold, d_fold)

    # Small batch / narrow dtype: VALU (sin polynomial) would bind before HBM
    # (esp. v7x) -> stream a precomputed pe table instead.  Large f32 batch:
    # compute pe in-kernel (amortised over batch, saves the pe HBM read).
    use_pe_input = (batch < 8) or (itemsize < 4)

    # ---- chip-aware VMEM budget ----
    try:
        vmem_cap = int(pltpu.get_tpu_info().vmem_capacity_bytes)
    except Exception:
        vmem_cap = 64 * 1024 * 1024          # conservative default (v7x-sized)
    if vmem_cap >= 100 * 1024 * 1024:        # v5e / v6e (128 MiB physical)
        budget, vmem_limit = 48 << 20, 96 << 20
    else:                                    # v7x (64 MiB physical)
        budget, vmem_limit = 16 << 20, 48 << 20

    sublane = max(8, 32 // itemsize)         # 8 f32, 16 bf16, 32 int8

    def max_fitting_rows(tb_):
        # in+out double-buffered, pe stream (double-buffered), f32 temporaries.
        per_row = (4 * tb_ * d_fold * itemsize
                   + (2 * d_fold * 4 if use_pe_input else 0)
                   + 3 * d_fold * 4)
        return budget // per_row

    # ---- batch tile: largest divisor of batch whose minimal-height block fits ----
    min_rows = min(sublane, s_fold)
    tb = 1
    for d in range(1, batch + 1):
        if batch % d == 0 and max_fitting_rows(d) >= min_rows:
            tb = d

    # ---- seq tile: VMEM-budgeted, sublane-aligned, prefer exact divisibility ----
    rows_cap = int(min(s_fold, 1024, max(1, max_fitting_rows(tb))))
    if s_fold % sublane == 0:
        tq = sublane
        c = (rows_cap // sublane) * sublane
        while c >= sublane:
            if s_fold % c == 0:
                tq = c
                break
            c -= sublane
        tq = min(tq, s_fold)
        num_s = s_fold // tq
    else:
        if s_fold <= rows_cap:
            tq = s_fold                       # full extent (legal block shape)
        else:
            tq = max(sublane, (rows_cap // sublane) * sublane)
        tq = min(tq, s_fold)
        num_s = pl.cdiv(s_fold, tq)           # ragged tail masked by Pallas
    num_b = batch // tb

    # ---- guarantee >= 2 grid steps (pipelining / megacore sharding) ----
    if num_b * num_s == 1:
        half = tq // 2
        if half >= sublane and half % sublane == 0 and s_fold % half == 0:
            tq = half
            num_s = s_fold // tq
        elif tb > 1:
            for d in range(tb - 1, 0, -1):
                if batch % d == 0:
                    tb = d
                    num_b = batch // tb
                    break

    grid = (num_b, num_s)
    x_spec = pl.BlockSpec((tb, tq, d_fold), lambda b, s: (b, s, 0))
    out_spec = pl.BlockSpec((tb, tq, d_fold), lambda b, s: (b, s, 0))
    out_shape = jax.ShapeDtypeStruct((batch, s_fold, d_fold), x.dtype)
    cparams = pltpu.CompilerParams(
        dimension_semantics=("parallel", "parallel"),
        vmem_limit_bytes=vmem_limit,
    )

    if use_pe_input:
        # Precompute the table exactly like the PyTorch registered buffer.
        position = jnp.arange(seq_len, dtype=jnp.float32)[:, None]
        div_term = jnp.exp(jnp.arange(0, d_model, 2, dtype=jnp.float32)
                           * (-math.log(10000.0) / d_model))
        ang = position * div_term
        pe = jnp.zeros((seq_len, d_model), jnp.float32)
        pe = pe.at[:, 0::2].set(jnp.sin(ang))
        pe = pe.at[:, 1::2].set(jnp.cos(ang))
        pe_f = pe.reshape(s_fold, d_fold)

        out_f = pl.pallas_call(
            _add_pe_kernel,
            out_shape=out_shape,
            grid_spec=pltpu.PrefetchScalarGridSpec(
                num_scalar_prefetch=0,
                grid=grid,
                in_specs=[pl.BlockSpec((tq, d_fold), lambda b, s: (s, 0)), x_spec],
                out_specs=out_spec,
            ),
            compiler_params=cparams,
        )(pe_f, x_f)
    else:
        kernel = functools.partial(
            _compute_pe_kernel, rows_per_block=tq, d_model=d_model, fold=fold)
        out_f = pl.pallas_call(
            kernel,
            out_shape=out_shape,
            grid_spec=pltpu.PrefetchScalarGridSpec(
                num_scalar_prefetch=0,
                grid=grid,
                in_specs=[x_spec],
                out_specs=out_spec,
            ),
            compiler_params=cparams,
        )(x_f)

    return out_f.reshape(batch, seq_len, d_model)


# ---------------------------------------------------------------------------
# Pure-JAX reference mirroring the PyTorch buffer construction
# ---------------------------------------------------------------------------
def _reference(x):
    _, seq_len, d_model = x.shape
    position = jnp.arange(seq_len, dtype=jnp.float32)[:, None]
    div_term = jnp.exp(jnp.arange(0, d_model, 2, dtype=jnp.float32)
                       * (-math.log(10000.0) / d_model))
    ang = position * div_term
    pe = jnp.zeros((seq_len, d_model), dtype=jnp.float32)
    pe = pe.at[:, 0::2].set(jnp.sin(ang))
    pe = pe.at[:, 1::2].set(jnp.cos(ang))
    return (x + pe[None, :, :].astype(x.dtype))


if __name__ == "__main__":
    key = jax.random.PRNGKey(0)
    k1, k2 = jax.random.split(key)

    # Small-batch shape -> precomputed-pe (broadcast-add) path.
    x1 = jax.random.normal(k1, (2, 8, 32), dtype=jnp.float32)
    out1 = positional_encoding(x1)
    jax.block_until_ready(out1)
    assert out1.shape == x1.shape and out1.dtype == x1.dtype
    assert jnp.allclose(out1, _reference(x1), atol=1e-5, rtol=1e-5)

    # Larger f32 batch -> in-kernel sinusoid path.
    x2 = jax.random.normal(k2, (8, 32, 32), dtype=jnp.float32)
    out2 = positional_encoding(x2)
    jax.block_until_ready(out2)
    assert out2.shape == x2.shape and out2.dtype == x2.dtype
    assert jnp.allclose(out2, _reference(x2), atol=1e-4, rtol=1e-4)

    print("KERNEL_OK")
</pallas_src>

<mosaic_0001>
module attributes {stable_mosaic.version = 11 : i64} {
  func.func @_add_pe_kernel(%arg0: i32, %arg1: i32, %arg2: memref<2x128xf32, #tpu.memory_space<vmem>>, %arg3: memref<1x2x128xf32, #tpu.memory_space<vmem>>, %arg4: memref<1x2x128xf32, #tpu.memory_space<vmem>>) attributes {dimension_semantics = [#tpu.dimension_semantics<parallel>, #tpu.dimension_semantics<parallel>], iteration_bounds = array<i64: 2, 1>, scalar_prefetch = 0 : i64, scratch_operands = 0 : i64, tpu.core_type = #tpu.core_type<tc>, window_params = [{transform_indices = @transform_0, window_bounds = array<i64: 2, 128>}, {transform_indices = @transform_1, window_bounds = array<i64: 1, 2, 128>}, {transform_indices = @transform_2, window_bounds = array<i64: 1, 2, 128>}]} {
    %c0 = arith.constant 0 : index
    %c0_0 = arith.constant 0 : index
    %c0_1 = arith.constant 0 : index
    %0 = vector.load %arg3[%c0, %c0_0, %c0_1] : memref<1x2x128xf32, #tpu.memory_space<vmem>>, vector<1x2x128xf32>
    %c0_2 = arith.constant 0 : index
    %c0_3 = arith.constant 0 : index
    %1 = vector.load %arg2[%c0_2, %c0_3] : memref<2x128xf32, #tpu.memory_space<vmem>>, vector<2x128xf32>
    %2 = vector.shape_cast %1 : vector<2x128xf32> to vector<1x2x128xf32>
    %3 = arith.addf %0, %2 : vector<1x2x128xf32>
    %c0_4 = arith.constant 0 : index
    %c0_5 = arith.constant 0 : index
    %c0_6 = arith.constant 0 : index
    %4 = vector.load %arg4[%c0_4, %c0_5, %c0_6] : memref<1x2x128xf32, #tpu.memory_space<vmem>>, vector<1x2x128xf32>
    tpu.vector_store %arg4[%c0_4, %c0_5, %c0_6], %3 {strides = array<i32>} : memref<1x2x128xf32, #tpu.memory_space<vmem>>, vector<1x2x128xf32>,
    return
  }
  func.func @transform_0(%arg0: i32, %arg1: i32) -> (i32, i32) {
    %c0_i32 = arith.constant 0 : i32
    %c0_i32_0 = arith.constant 0 : i32
    return %arg1, %c0_i32 : i32, i32
  }
  func.func @transform_1(%arg0: i32, %arg1: i32) -> (i32, i32, i32) {
    %c0_i32 = arith.constant 0 : i32
    %c0_i32_0 = arith.constant 0 : i32
    return %arg0, %arg1, %c0_i32 : i32, i32, i32
  }
  func.func @transform_2(%arg0: i32, %arg1: i32) -> (i32, i32, i32) {
    %c0_i32 = arith.constant 0 : i32
    %c0_i32_0 = arith.constant 0 : i32
    return %arg0, %arg1, %c0_i32 : i32, i32, i32
  }
}

</mosaic_0001>

<bundles_post_ra>
// kernel: tpu_custom_call.1
= control target key start
LH: loop header
LB: loop body
LE: loop exit
PB: predicated region body
PF: predicated region fallthrough
CT: control target
= control target key end

     0   :  { %7 = vsyncpa [#allocation3], 0  ;;  %s777_s0 = inlined_call_operand.hbm [shape: f32[2,128], index: 0, kind: input, shape index: {}]   ;;  %s778_s1 = inlined_call_operand.hbm [shape: f32[2,2,128], index: 1, kind: input, shape index: {}]   ;;  %s779_s2 = inlined_call_operand.hbm [shape: f32[2,2,128], index: 2, kind: output, shape index: {}]  }
   0x1   :  { %8 = vsyncpa [#allocation6], 0 }
   0x2   :  { %10 = vsyncpa [#allocation6 + $0x1], 0 }
   0x3   :  { %11 = vsyncpa [#allocation4], 0 }
   0x4   :  { %13 = vsyncpa [#allocation4 + $0x1], 0  ;;  %s561_s9 = smov 0   ;;  %s563_s10 = smov 0  }
   0x5   :  { %s565_s11 = smov 0   ;;  %s567_s12 = smov 0  }
   0x6   :  { %s569_s13 = smov 0   ;;  %s571_s14 = smov 0  }
   0x7 LB: > { %s309_s15 = sadd.s32 4294967295, %s541_s14   ;;  %s310_s16 = sadd.s32 4294967294, %s541_s14   ;;  %s541_s14 = sphi %s571_s14, %s19_s14   ;;  %s537_s13 = sphi %s569_s13, %s804_s13   ;;  %s533_s12 = sphi %s567_s12, %s803_s12   ;;  %s529_s11 = sphi %s565_s11, %s802_s11   ;;  %s525_s10 = sphi %s563_s10, %s801_s10   ;;  %s521_s9 = sphi %s561_s9, %s800_s9  }
   0x8   : > { %p79_p0 = scmp.ne.s32.totalorder %s525_s10, %s521_s9  ;;  %p595_p1 = scmp.eq.s32.totalorder %s309_s15, 0 }
   0x9   : > { %p599_p2 = scmp.eq.s32.totalorder %s309_s15, 1  ;;  %p111_p3 = scmp.eq.s32.totalorder %s310_s16, 1 }
   0xa   : > { %s784_s17 = scalar_select %p595_p1, 1, 0 }
   0xb   : > { %s785_s18 = scalar_select %p599_p2, 1, 0 }
   0xc   : > { %p605_p4 = por %p595_p1, %p79_p0  ;;  %p311_p5 = scmp.ge.s32.totalorder %s541_s14, 1 }
   0xd   : > { %p610_p6 = por %p111_p3, %p79_p0  ;;  %p118_p7 = scmp.lt.s32.totalorder %s541_s14, 3 }
   0xe   : > { %s786_s19 = scalar_select %p605_p4, 1, 0 }
   0xf   : > { %s787_s20 = scalar_select %p610_p6, 1, 0 }
  0x10   : > { %p615_p8 = pnand %p311_p5, %p118_p7  ;;  %s543_s22 = smov [#allocation2]  }
  0x11   : > { %s133_s23 = sshll.u32 %s543_s22, 4  ;;  %s31_s25 = sadd.s32 1, %s537_s13  ;;  %s134_s23 = int_to_ptr.vmem [resolvable:$true] %s133_s23 }
  0x12   : > { %s788_s21 = scalar_select %p615_p8, 1, 0 }
  0x13   : > { %p332_p10 = pneg %p615_p8  ;;  %s66_s26 = sadd.s32 1, %s529_s11 }
  0x14   : > { %p630_p12 = scmp.ge.s32.totalorder %s31_s25, 2  ;;  %s397_s30 = scalar_lea.hbm %s777_s0, 32 }
  0x15   : > { %p624_p11 = pnand %p332_p10, %p595_p1  ;;  %p398_p13 = scmp.ne.s32.totalorder %s777_s0, %s397_s30 }
  0x16   : > { %s790_s27 = scalar_select %p630_p12, 1, 0 }
  0x17   : > { %p399_p0 = pneg %p624_p11  ;;  %p404_p7 = scmp.lt.u32.totalorder %s397_s30, %s777_s0 }
  0x19   : > { %p400_p3 = pnand %p399_p0, %p398_p13 }
  0x1b   : > { %p401_p5 = pneg %p400_p3 }
  0x1d   : > { %p406_p10 = pnand %p404_p7, %p401_p5 }
  0x1f   : > { %409 = shalt.err (!%p406_p10)
}
  0x20   : > { %s410_s7 = scalar_lea.vmem %s134_s23, 32  ;;  %p418_p1 = scmp.lt.s32.totalorder %s134_s23, %s134_s23 }
  0x21   : > { %p411_p9 = scmp.ne.s32.totalorder %s134_s23, %s410_s7  ;;  %p419_p8 = scmp.lt.s32.totalorder %s410_s7, %s410_s7 }
  0x23   : > { %p413_p6 = pnand %p411_p9, %p399_p0  ;;  %p420_p2 = por %p419_p8, %p418_p1 }
  0x25   : > { %p414_p4 = pneg %p413_p6 }
  0x27   : > { %p421_p12 = pnand %p420_p2, %p414_p4 }
  0x29   : > { %424 = shalt.err (!%p421_p12)
}
  0x2a   : > { %335 = dma.hbm_to_vmem [thread:$0]  (!%p624_p11), %s777_s0, 32, %s134_s23, [#allocation3]  }
  0x2b   : > { %p791_p1 = scmp.ne.s32.totalorder %s790_s27, 0  ;;  %p73_p2 = scmp.ne.s32.totalorder %s529_s11, %s525_s10 }
  0x2c   : > { %p74_p4 = scmp.eq.s32.totalorder %s541_s14, 0  ;;  %p345_p6 = scmp.lt.s32.totalorder %s541_s14, 2 }
  0x2d   : > { %s806_s25 = smov (%p791_p1, %s31_s25), 0  ;;  %p792_p12 = scmp.ne.s32.totalorder %s785_s18, 0 }
  0x2e   : > { %s61_s16 = ssub.s32 %s537_s13, %s806_s25  ;;  %p75_p9 = por %p74_p4, %p73_p2 }
  0x2f   : > { %p64_p8 = scmp.eq.s32.totalorder %s61_s16, 0  ;;  %p662_p13 = por %p792_p12, %p73_p2 }
  0x30   : > { %s144_s24 = sand.u32 1, %s529_s11   ;;  %s315_s27 = sshll.u32 %s537_s13, 5 }
  0x31   : > { %s670_s28 = scalar_select %p64_p8, %s529_s11, %s66_s26  }
  0x32   : > { %s314_s23 = sshll.u32 %s144_s24, 1  ;;  %s676_s3 = scalar_lea.hbm %s778_s1, %s315_s27 }
  0x33   : > { %s148_s18 = scalar_lea.vmem [#allocation5], %s314_s23  ;;  %p680_p11 = pnand %p345_p6, %p75_p9 }
  0x34   : > { %s156_s4 = sshll.u32 %s148_s18, 4  ;;  %s145_s26 = scalar_lea.sflag [#allocation6], %s144_s24  ;;  %s678_s4 = int_to_ptr.vmem [resolvable:$true] %s156_s4 }
  0x35   : > { %s425_s6 = scalar_lea.hbm %s676_s3, 32  ;;  %p427_p3 = pneg %p680_p11 }
  0x36   : > { %p426_p0 = scmp.ne.s32.totalorder %s676_s3, %s425_s6  ;;  %s430_s15 = scalar_lea.hbm %s778_s1, 64 }
  0x37   : > { %p431_p10 = scmp.lt.u32.totalorder %s676_s3, %s778_s1  ;;  %p432_p1 = scmp.lt.u32.totalorder %s430_s15, %s425_s6 }
  0x38   : > { %p428_p5 = pnand %p427_p3, %p426_p0  ;;  %p434_p4 = scmp.lt.u32.totalorder %s425_s6, %s676_s3 }
  0x39   : > { %p433_p2 = por %p432_p1, %p431_p10 }
  0x3a   : > { %p429_p7 = pneg %p428_p5 }
  0x3b   : > { %p435_p6 = por %p434_p4, %p433_p2 }
  0x3d   : > { %p436_p8 = pnand %p435_p6, %p429_p7 }
  0x3f   : > { %439 = shalt.err (!%p436_p8)
}
  0x40   : > { %s440_s24 = scalar_lea.vmem %s678_s4, 32  ;;  %s544_s27 = smov [#allocation5]  }
  0x41   : > { %p441_p9 = scmp.ne.s32.totalorder %s678_s4, %s440_s24  ;;  %s445_s29 = sshll.u32 %s544_s27, 4  ;;  %s446_s29 = int_to_ptr.vmem [resolvable:$false] %s445_s29 }
  0x42   : > { %s447_s30 = scalar_lea.vmem %s446_s29, 64  ;;  %p448_p5 = scmp.lt.s32.totalorder %s678_s4, %s446_s29 }
  0x43   : > { %p443_p12 = pnand %p441_p9, %p427_p3  ;;  %p449_p10 = scmp.lt.s32.totalorder %s447_s30, %s440_s24 }
  0x45   : > { %p444_p0 = pneg %p443_p12  ;;  %p450_p1 = por %p449_p10, %p448_p5 }
  0x47   : > { %p451_p2 = pnand %p450_p1, %p444_p0 }
  0x49   : > { %454 = shalt.err (!%p451_p2)
}
  0x4a   : > { %339 = dma.hbm_to_vmem [thread:$0]  (!%p680_p11), %s676_s3, 32, %s678_s4, %s145_s26  }
  0x4b   : > { %p795_p7 = scmp.ne.s32.totalorder %s788_s21, 0 }
  0x4c   : > { %p796_p3 = scmp.ne.s32.totalorder (!%p795_p7), %s784_s17, 0 }
  0x4d   : > { %165 = sbr.rel (%p795_p7) target bundleno = 114 (0x72), region = 28 }
  0x54   : > { %508 = dma.done.wait (%p796_p3), [#allocation3], 32  }
  0x55   : > { %510 = vsyncadd (%p796_p3), [#allocation3], 4294967264  ;;  %s716_s18 = sand.u32 1, %s525_s10   ;;  %p797_p4 = scmp.ne.s32.totalorder %s786_s19, 0 }
  0x56   : > { %s318_s6 = sshll.u32 %s716_s18, 1  ;;  %s172_s5 = scalar_lea.sflag [#allocation6], %s716_s18 }
  0x57   : > { %s175_s7 = scalar_lea.vmem [#allocation5], %s318_s6 }
  0x58   : > { %512 = dma.done.wait (%p797_p4), %s172_s5, 32  }
  0x59   : > { %514 = vsyncadd (%p797_p4), %s172_s5, 4294967264  ;;  %s195_s21 = scalar_lea.vmem [#allocation7], %s318_s6  ;;  %s321_s3 = sshll.u32 %s533_s12, 5  ;;  %v196_v0 = vld [vmem:[%s175_s7] sm:$0x3] }
  0x5a   : > { %s215_s17 = sshll.u32 %s195_s21, 4  ;;  %v197_v1 = vld [vmem:[#allocation2] sm:$0x3]  ;;  %s730_s8 = scalar_lea.hbm %s779_s2, %s321_s3  ;;  %s725_s17 = int_to_ptr.vmem [resolvable:$true] %s215_s17 }
  0x5b   : > { %v198_v2 = vadd.f32 %v197_v1, %v196_v0  ;;  %s201_s19 = scalar_lea.sflag [#allocation4], %s716_s18  ;;  %s455_s15 = scalar_lea.vmem %s725_s17, 32 }
  0x5c   : > { %p456_p11 = scmp.ne.s32.totalorder %s725_s17, %s455_s15  ;;  %s545_s12 = smov [#allocation7]  }
  0x5d   : > { %199 = vst [vmem:[%s195_s21] sm:$0x3] %v198_v2  ;;  %s459_s16 = sshll.u32 %s545_s12, 4  ;;  %s460_s16 = int_to_ptr.vmem [resolvable:$false] %s459_s16 }
  0x5e   : > { %p457_p6 = pnand %p456_p11, %p662_p13  ;;  %s461_s23 = scalar_lea.vmem %s460_s16, 64 }
  0x5f   : > { %p462_p9 = scmp.lt.s32.totalorder %s725_s17, %s460_s16  ;;  %p463_p12 = scmp.lt.s32.totalorder %s461_s23, %s455_s15 }
  0x60   : > { %p458_p8 = pneg %p457_p6 }
  0x61   : > { %p464_p0 = por %p463_p12, %p462_p9 }
  0x63   : > { %p465_p5 = pnand %p464_p0, %p458_p8 }
  0x65   : > { %468 = shalt.err (!%p465_p5)
}
  0x66   : > { %s469_s24 = scalar_lea.hbm %s730_s8, 32  ;;  %s473_s30 = scalar_lea.hbm %s779_s2, 64 }
  0x67   : > { %p470_p10 = scmp.ne.s32.totalorder %s730_s8, %s469_s24  ;;  %p474_p7 = scmp.lt.u32.totalorder %s730_s8, %s779_s2 }
  0x68   : > { %p475_p3 = scmp.lt.u32.totalorder %s473_s30, %s469_s24  ;;  %p477_p11 = scmp.lt.u32.totalorder %s469_s24, %s730_s8 }
  0x69   : > { %p471_p1 = pnand %p470_p10, %p662_p13 }
  0x6a   : > { %p476_p4 = por %p475_p3, %p474_p7 }
  0x6b   : > { %p472_p2 = pneg %p471_p1 }
  0x6c   : > { %p478_p6 = por %p477_p11, %p476_p4 }
  0x6e   : > { %p479_p8 = pnand %p478_p6, %p472_p2 }
  0x70   : > { %482 = shalt.err (!%p479_p8)
}
  0x71   : > { %330 = dma.vmem_to_hbm [thread:$0]  (%p662_p13), %s725_s17, 32, %s730_s8, %s201_s19  }
  0x72 PF: > { %s227_s5 = sand.u32 1, %s521_s9   ;;  %p798_p9 = scmp.ne.s32.totalorder %s787_s20, 0 }
  0x73   : > { %p799_p12 = scmp.ge.s32.totalorder %s541_s14, 2  ;;  %s228_s7 = scalar_lea.sflag [#allocation4], %s227_s5 }
  0x75   : > { %p341_p0 = pnand %p799_p12, %p798_p9 }
  0x77   : > { %516 = dma.done.wait (!%p341_p0), %s228_s7, 32  }
  0x78   : > { %518 = vsyncadd (!%p341_p0), %s228_s7, 4294967264  ;;  %s19_s14 = sadd.s32 1, %s541_s14   ;;  %s800_s9 = smov %s525_s10 }
  0x79   : > { %p16_p5 = scmp.ge.s32.totalorder %s19_s14, 4   ;;  %s801_s10 = smov %s529_s11 }
  0x7a   : > { %s802_s11 = smov %s670_s28  ;;  %s803_s12 = smov %s537_s13 }
  0x7b   : > { %s804_s13 = smov %s806_s25  ;;  %18 = sbr.rel (!%p16_p5) target bundleno = 7 (0x7), region = 79 }
  0x82   :  { %233 = vsyncpa [#allocation3], 1 }
  0x83   :  { %235 = vsyncpa [#allocation3 + $0x1], 1 }
  0x84   :  { %236 = vsyncpa [#allocation6], 1 }
  0x85   :  { %238 = vsyncpa [#allocation6 + $0x1], 1 }
  0x86   :  { %239 = vsyncpa [#allocation4], 1 }
  0x87   :  { %241 = vsyncpa [#allocation4 + $0x1], 1 }

</bundles_post_ra>
